<compile_context>
chip_gen: v6e
topology: v6e:2x2x1
jax: 0.10.0
libtpu: 0.0.40
codegen_flags: <defaults>
</compile_context>

<pallas_src>
import jax
import jax.numpy as jnp
from jax import lax
from jax.experimental import pallas as pl
from jax.experimental.pallas import tpu as pltpu


def _round_up(x, m):
    return ((x + m - 1) // m) * m


# ----------------------------------------------------------------------------
# Fused kernel: Conv3x3(no bias) + BN(eval) + ReLU + [Dropout=id] + Conv1x1+b
# ----------------------------------------------------------------------------
def _make_fcn_head_kernel(H, W, pad):
    N = H * W

    def kernel(x_ref, w1_ref, bn_s_ref, bn_t_ref, w2_ref, b2_ref, o_ref,
               xp_ref):
        # x_ref : (1, Cin, N)        image, channels on sublanes, N on lanes
        # w1_ref: (9, Cinter, Cin)   3x3 conv weights, tap-major (kh*3 + kw)
        # bn_s/t: (Cinter, 1)        folded BatchNorm2d affine (eval mode)
        # w2_ref: (Cout, Cinter)     final 1x1 conv weight
        # b2_ref: (Cout, 1)          final 1x1 conv bias
        # o_ref : (1, Cout, N)
        # xp_ref: (Cin, N + 2*pad)   VMEM scratch: zero-padded flat image
        cin = x_ref.shape[1]
        cinter = w1_ref.shape[1]

        # Build the zero-padded flattened image in VMEM.  pad >= W + 1, so
        # every 3x3 tap below is a static in-bounds lane slice of the scratch,
        # and the halo zeros take care of the out-of-image rows (dh = +/-1).
        xp_ref[:, :pad] = jnp.zeros((cin, pad), jnp.float32)
        xp_ref[:, pad + N:] = jnp.zeros((cin, pad), jnp.float32)
        xp_ref[:, pad:pad + N] = x_ref[0]

        # Column-validity masks: only the horizontal wrap across image rows
        # needs masking (vertical out-of-image taps land in the zero halo).
        col = lax.broadcasted_iota(jnp.int32, (1, N), 1) % W
        ok_left = col >= 1           # tap column w-1 is inside the image
        ok_right = col <= W - 2      # tap column w+1 is inside the image

        # 3x3 conv as 9 shifted 1x1 convs accumulated on the MXU in f32.
        acc = jnp.zeros((cinter, N), jnp.float32)
        for dh in (-1, 0, 1):
            for dw in (-1, 0, 1):
                off = dh * W + dw
                tap = xp_ref[:, pad + off:pad + off + N]          # (Cin, N)
                if dw == -1:
                    tap = jnp.where(ok_left, tap, 0.0)
                elif dw == 1:
                    tap = jnp.where(ok_right, tap, 0.0)
                w_tap = w1_ref[(dh + 1) * 3 + (dw + 1)]           # (Cinter, Cin)
                acc = acc + jnp.dot(w_tap, tap,
                                    preferred_element_type=jnp.float32)

        # BatchNorm (eval, folded per-channel affine) + ReLU.
        # Dropout(p=0.1) is the identity in eval mode.
        h1 = jnp.maximum(acc * bn_s_ref[...] + bn_t_ref[...], 0.0)  # (Cinter, N)

        # Final 1x1 conv with bias.
        out = jnp.dot(w2_ref[...], h1,
                      preferred_element_type=jnp.float32) + b2_ref[...]
        o_ref[0] = out.astype(o_ref.dtype)

    return kernel


def fcn_head_forward(x_nchw, params):
    B, Cin, H, W = x_nchw.shape
    N = H * W
    pad = _round_up(W + 1, 128)          # lane-aligned flat halo
    w1 = params["w1_taps"]               # (9, Cinter, Cin)
    Cinter = w1.shape[1]
    Cout = params["w2"].shape[0]

    x_flat = x_nchw.reshape(B, Cin, N)   # contiguous reshape, no transpose

    out_flat = pl.pallas_call(
        _make_fcn_head_kernel(H, W, pad),
        out_shape=jax.ShapeDtypeStruct((B, Cout, N), jnp.float32),
        grid=(B,),
        in_specs=[
            pl.BlockSpec((1, Cin, N), lambda b: (b, 0, 0)),
            pl.BlockSpec((9, Cinter, Cin), lambda b: (0, 0, 0)),
            pl.BlockSpec((Cinter, 1), lambda b: (0, 0)),
            pl.BlockSpec((Cinter, 1), lambda b: (0, 0)),
            pl.BlockSpec((Cout, Cinter), lambda b: (0, 0)),
            pl.BlockSpec((Cout, 1), lambda b: (0, 0)),
        ],
        out_specs=pl.BlockSpec((1, Cout, N), lambda b: (b, 0, 0)),
        scratch_shapes=[pltpu.VMEM((Cin, N + 2 * pad), jnp.float32)],
        compiler_params=pltpu.CompilerParams(
            dimension_semantics=("parallel",)),
    )(x_flat, w1, params["bn_s"], params["bn_t"], params["w2"], params["b2"])

    return out_flat.reshape(B, Cout, H, W)


# ----------------------------------------------------------------------------
# Parameter construction (deterministic, synthetic)
# ----------------------------------------------------------------------------
def _bn_affine(weight, bias, mean, var, eps=1e-5):
    s = weight / jnp.sqrt(var + eps)
    t = bias - mean * s
    return s.reshape(-1, 1), t.reshape(-1, 1)


def init_params(key, inplanes, planes):
    inter = inplanes // 4
    ks = jax.random.split(key, 7)

    # Conv2d(inplanes, inter, 3, padding=1, bias=False)
    b1 = 1.0 / ((inplanes * 9) ** 0.5)
    w1 = jax.random.uniform(ks[0], (inter, inplanes, 3, 3), jnp.float32, -b1, b1)

    # BatchNorm2d(inter) -- eval-mode running statistics, folded to affine
    bn_w = jax.random.uniform(ks[1], (inter,), jnp.float32, 0.5, 1.5)
    bn_b = jax.random.uniform(ks[2], (inter,), jnp.float32, -0.1, 0.1)
    bn_m = jax.random.uniform(ks[3], (inter,), jnp.float32, -0.1, 0.1)
    bn_v = jax.random.uniform(ks[4], (inter,), jnp.float32, 0.5, 1.5)
    bn_s, bn_t = _bn_affine(bn_w, bn_b, bn_m, bn_v)

    # Conv2d(inter, planes, 1, bias=True)
    b2 = 1.0 / (inter ** 0.5)
    w2 = jax.random.uniform(ks[5], (planes, inter, 1, 1), jnp.float32, -b2, b2)
    bias2 = jax.random.uniform(ks[6], (planes,), jnp.float32, -b2, b2)

    # Kernel layout: taps-major conv1 weights, 2-D conv2 weight, column bias.
    w1_taps = jnp.transpose(w1, (2, 3, 0, 1)).reshape(9, inter, inplanes)
    return dict(
        w1_taps=w1_taps, bn_s=bn_s, bn_t=bn_t,
        w2=w2.reshape(planes, inter), b2=bias2.reshape(planes, 1),
        # original layouts kept for the pure-JAX reference
        w1_oihw=w1, w2_oihw=w2,
    )


# Pure-JAX reference (same eval-mode math) for a sanity check.
def reference_forward(x_nchw, params):
    y = lax.conv_general_dilated(
        x_nchw, params["w1_oihw"], window_strides=(1, 1),
        padding=((1, 1), (1, 1)),
        dimension_numbers=("NCHW", "OIHW", "NCHW"),
        precision=lax.Precision.HIGHEST)
    y = y * params["bn_s"].reshape(1, -1, 1, 1) + params["bn_t"].reshape(1, -1, 1, 1)
    y = jnp.maximum(y, 0.0)
    # Dropout(p=0.1) is identity in eval mode.
    out = lax.conv_general_dilated(
        y, params["w2_oihw"], window_strides=(1, 1), padding="VALID",
        dimension_numbers=("NCHW", "OIHW", "NCHW"),
        precision=lax.Precision.HIGHEST)
    return out + params["b2"].reshape(1, -1, 1, 1)


if __name__ == "__main__":
    key = jax.random.PRNGKey(0)
    k_x, k_p = jax.random.split(key)

    B, inplanes, H, W = 2, 16, 16, 16      # inter_planes = inplanes // 4 = 4
    planes = 4

    x = jax.random.normal(k_x, (B, inplanes, H, W), dtype=jnp.float32)
    params = init_params(k_p, inplanes, planes)

    out = jax.block_until_ready(fcn_head_forward(x, params))
    assert out.shape == (B, planes, H, W)

    ref = jax.block_until_ready(reference_forward(x, params))
    max_err = float(jnp.max(jnp.abs(out - ref)))
    assert jnp.allclose(out, ref, atol=5e-3, rtol=5e-3), max_err

    print("KERNEL_OK")
</pallas_src>

<mosaic_0001>
module attributes {stable_mosaic.version = 11 : i64} {
  func.func @kernel(%arg0: i32, %arg1: memref<1x16x256xf32, #tpu.memory_space<vmem>>, %arg2: memref<9x4x16xf32, #tpu.memory_space<vmem>>, %arg3: memref<4x1xf32, #tpu.memory_space<vmem>>, %arg4: memref<4x1xf32, #tpu.memory_space<vmem>>, %arg5: memref<4x4xf32, #tpu.memory_space<vmem>>, %arg6: memref<4x1xf32, #tpu.memory_space<vmem>>, %arg7: memref<1x4x256xf32, #tpu.memory_space<vmem>>, %arg8: memref<16x512xf32, #tpu.memory_space<vmem>>) attributes {dimension_semantics = [#tpu.dimension_semantics<parallel>], iteration_bounds = array<i64: 2>, scalar_prefetch = 0 : i64, scratch_operands = 1 : i64, tpu.core_type = #tpu.core_type<tc>, window_params = [{transform_indices = @transform_0, window_bounds = array<i64: 1, 16, 256>}, {pipeline_mode = #tpu.pipeline_mode<synchronous>, transform_indices = @transform_1, window_bounds = array<i64: 9, 4, 16>}, {pipeline_mode = #tpu.pipeline_mode<synchronous>, transform_indices = @transform_2, window_bounds = array<i64: 4, 1>}, {pipeline_mode = #tpu.pipeline_mode<synchronous>, transform_indices = @transform_3, window_bounds = array<i64: 4, 1>}, {pipeline_mode = #tpu.pipeline_mode<synchronous>, transform_indices = @transform_4, window_bounds = array<i64: 4, 4>}, {pipeline_mode = #tpu.pipeline_mode<synchronous>, transform_indices = @transform_5, window_bounds = array<i64: 4, 1>}, {transform_indices = @transform_6, window_bounds = array<i64: 1, 4, 256>}]} {
    %cst = arith.constant 0.000000e+00 : f32
    %0 = vector.broadcast %cst : f32 to vector<16x128xf32>
    %c0 = arith.constant 0 : index
    %c0_0 = arith.constant 0 : index
    %1 = vector.load %arg8[%c0, %c0_0] : memref<16x512xf32, #tpu.memory_space<vmem>>, vector<16x128xf32>
    tpu.vector_store %arg8[%c0, %c0_0], %0 {strides = array<i32>} : memref<16x512xf32, #tpu.memory_space<vmem>>, vector<16x128xf32>,
    %cst_1 = arith.constant 0.000000e+00 : f32
    %2 = vector.broadcast %cst_1 : f32 to vector<16x128xf32>
    %c0_2 = arith.constant 0 : index
    %c384 = arith.constant 384 : index
    %3 = vector.load %arg8[%c0_2, %c384] : memref<16x512xf32, #tpu.memory_space<vmem>>, vector<16x128xf32>
    tpu.vector_store %arg8[%c0_2, %c384], %2 {strides = array<i32>} : memref<16x512xf32, #tpu.memory_space<vmem>>, vector<16x128xf32>,
    %c0_3 = arith.constant 0 : index
    %c0_4 = arith.constant 0 : index
    %c0_5 = arith.constant 0 : index
    %4 = vector.load %arg1[%c0_3, %c0_4, %c0_5] : memref<1x16x256xf32, #tpu.memory_space<vmem>>, vector<1x16x256xf32>
    %5 = vector.shape_cast %4 : vector<1x16x256xf32> to vector<16x256xf32>
    %c0_6 = arith.constant 0 : index
    %c128 = arith.constant 128 : index
    %6 = vector.load %arg8[%c0_6, %c128] : memref<16x512xf32, #tpu.memory_space<vmem>>, vector<16x256xf32>
    tpu.vector_store %arg8[%c0_6, %c128], %5 {strides = array<i32>} : memref<16x512xf32, #tpu.memory_space<vmem>>, vector<16x256xf32>,
    %7 = tpu.iota {dimensions = array<i32: 1>} : vector<1x256xi32>
    %c16_i32 = arith.constant 16 : i32
    %c0_i32 = arith.constant 0 : i32
    %8 = arith.cmpi eq, %c16_i32, %c0_i32 : i32
    %c1_i32 = arith.constant 1 : i32
    %9 = arith.select %8, %c1_i32, %c16_i32 : i32
    %10 = vector.broadcast %9 : i32 to vector<1x256xi32>
    %11 = arith.remsi %7, %10 : vector<1x256xi32>
    %c0_i32_7 = arith.constant 0 : i32
    %12 = vector.broadcast %c0_i32_7 : i32 to vector<1x256xi32>
    %13 = arith.cmpi ne, %11, %12 : vector<1x256xi32>
    %c0_i32_8 = arith.constant 0 : i32
    %14 = vector.broadcast %c0_i32_8 : i32 to vector<1x256xi32>
    %15 = arith.cmpi slt, %11, %14 : vector<1x256xi32>
    %c0_i32_9 = arith.constant 0 : i32
    %16 = arith.cmpi slt, %9, %c0_i32_9 : i32
    %17 = vector.broadcast %16 : i1 to vector<1x256xi1>
    %18 = vector.broadcast %17 : vector<1x256xi1> to vector<1x256xi1>
    %19 = arith.xori %15, %18 : vector<1x256xi1>
    %20 = arith.andi %19, %13 : vector<1x256xi1>
    %21 = vector.broadcast %9 : i32 to vector<1x256xi32>
    %22 = arith.addi %11, %21 : vector<1x256xi32>
    %23 = arith.select %20, %22, %11 : vector<1x256xi1>, vector<1x256xi32>
    %c1_i32_10 = arith.constant 1 : i32
    %24 = vector.broadcast %c1_i32_10 : i32 to vector<1x256xi32>
    %25 = arith.cmpi sge, %23, %24 : vector<1x256xi32>
    %c14_i32 = arith.constant 14 : i32
    %26 = vector.broadcast %c14_i32 : i32 to vector<1x256xi32>
    %27 = arith.cmpi sle, %23, %26 : vector<1x256xi32>
    %cst_11 = arith.constant 0.000000e+00 : f32
    %28 = vector.broadcast %cst_11 : f32 to vector<4x256xf32>
    %c0_12 = arith.constant 0 : index
    %c111 = arith.constant 111 : index
    %29 = vector.load %arg8[%c0_12, %c111] : memref<16x512xf32, #tpu.memory_space<vmem>>, vector<16x256xf32>
    %cst_13 = arith.constant 0.000000e+00 : f32
    %30 = vector.shape_cast %25 : vector<1x256xi1> to vector<1x256xi1>
    %31 = vector.broadcast %30 : vector<1x256xi1> to vector<16x256xi1>
    %32 = vector.broadcast %cst_13 : f32 to vector<16x256xf32>
    %33 = arith.select %31, %29, %32 : vector<16x256xi1>, vector<16x256xf32>
    %c0_14 = arith.constant 0 : index
    %c0_15 = arith.constant 0 : index
    %c0_16 = arith.constant 0 : index
    %34 = vector.load %arg2[%c0_14, %c0_15, %c0_16] : memref<9x4x16xf32, #tpu.memory_space<vmem>>, vector<1x4x16xf32>
    %35 = vector.shape_cast %34 : vector<1x4x16xf32> to vector<4x16xf32>
    %cst_17 = arith.constant dense<0.000000e+00> : vector<4x256xf32>
    %36 = tpu.matmul %35, %33, %cst_17 {dimension_numbers = #tpu.dot_dimension_numbers<[1], [0], [0], [1], [0, 0, 1, 1], [], []>} : vector<4x16xf32>, vector<16x256xf32>, vector<4x256xf32> -> vector<4x256xf32>
    %37 = arith.addf %28, %36 : vector<4x256xf32>
    %c0_18 = arith.constant 0 : index
    %c112 = arith.constant 112 : index
    %38 = vector.load %arg8[%c0_18, %c112] : memref<16x512xf32, #tpu.memory_space<vmem>>, vector<16x256xf32>
    %c1 = arith.constant 1 : index
    %c0_19 = arith.constant 0 : index
    %c0_20 = arith.constant 0 : index
    %39 = vector.load %arg2[%c1, %c0_19, %c0_20] : memref<9x4x16xf32, #tpu.memory_space<vmem>>, vector<1x4x16xf32>
    %40 = vector.shape_cast %39 : vector<1x4x16xf32> to vector<4x16xf32>
    %cst_21 = arith.constant dense<0.000000e+00> : vector<4x256xf32>
    %41 = tpu.matmul %40, %38, %cst_21 {dimension_numbers = #tpu.dot_dimension_numbers<[1], [0], [0], [1], [0, 0, 1, 1], [], []>} : vector<4x16xf32>, vector<16x256xf32>, vector<4x256xf32> -> vector<4x256xf32>
    %42 = arith.addf %37, %41 : vector<4x256xf32>
    %c0_22 = arith.constant 0 : index
    %c113 = arith.constant 113 : index
    %43 = vector.load %arg8[%c0_22, %c113] : memref<16x512xf32, #tpu.memory_space<vmem>>, vector<16x256xf32>
    %cst_23 = arith.constant 0.000000e+00 : f32
    %44 = vector.shape_cast %27 : vector<1x256xi1> to vector<1x256xi1>
    %45 = vector.broadcast %44 : vector<1x256xi1> to vector<16x256xi1>
    %46 = vector.broadcast %cst_23 : f32 to vector<16x256xf32>
    %47 = arith.select %45, %43, %46 : vector<16x256xi1>, vector<16x256xf32>
    %c2 = arith.constant 2 : index
    %c0_24 = arith.constant 0 : index
    %c0_25 = arith.constant 0 : index
    %48 = vector.load %arg2[%c2, %c0_24, %c0_25] : memref<9x4x16xf32, #tpu.memory_space<vmem>>, vector<1x4x16xf32>
    %49 = vector.shape_cast %48 : vector<1x4x16xf32> to vector<4x16xf32>
    %cst_26 = arith.constant dense<0.000000e+00> : vector<4x256xf32>
    %50 = tpu.matmul %49, %47, %cst_26 {dimension_numbers = #tpu.dot_dimension_numbers<[1], [0], [0], [1], [0, 0, 1, 1], [], []>} : vector<4x16xf32>, vector<16x256xf32>, vector<4x256xf32> -> vector<4x256xf32>
    %51 = arith.addf %42, %50 : vector<4x256xf32>
    %c0_27 = arith.constant 0 : index
    %c127 = arith.constant 127 : index
    %52 = vector.load %arg8[%c0_27, %c127] : memref<16x512xf32, #tpu.memory_space<vmem>>, vector<16x256xf32>
    %cst_28 = arith.constant 0.000000e+00 : f32
    %53 = vector.shape_cast %25 : vector<1x256xi1> to vector<1x256xi1>
    %54 = vector.broadcast %53 : vector<1x256xi1> to vector<16x256xi1>
    %55 = vector.broadcast %cst_28 : f32 to vector<16x256xf32>
    %56 = arith.select %54, %52, %55 : vector<16x256xi1>, vector<16x256xf32>
    %c3 = arith.constant 3 : index
    %c0_29 = arith.constant 0 : index
    %c0_30 = arith.constant 0 : index
    %57 = vector.load %arg2[%c3, %c0_29, %c0_30] : memref<9x4x16xf32, #tpu.memory_space<vmem>>, vector<1x4x16xf32>
    %58 = vector.shape_cast %57 : vector<1x4x16xf32> to vector<4x16xf32>
    %cst_31 = arith.constant dense<0.000000e+00> : vector<4x256xf32>
    %59 = tpu.matmul %58, %56, %cst_31 {dimension_numbers = #tpu.dot_dimension_numbers<[1], [0], [0], [1], [0, 0, 1, 1], [], []>} : vector<4x16xf32>, vector<16x256xf32>, vector<4x256xf32> -> vector<4x256xf32>
    %60 = arith.addf %51, %59 : vector<4x256xf32>
    %c0_32 = arith.constant 0 : index
    %c128_33 = arith.constant 128 : index
    %61 = vector.load %arg8[%c0_32, %c128_33] : memref<16x512xf32, #tpu.memory_space<vmem>>, vector<16x256xf32>
    %c4 = arith.constant 4 : index
    %c0_34 = arith.constant 0 : index
    %c0_35 = arith.constant 0 : index
    %62 = vector.load %arg2[%c4, %c0_34, %c0_35] : memref<9x4x16xf32, #tpu.memory_space<vmem>>, vector<1x4x16xf32>
    %63 = vector.shape_cast %62 : vector<1x4x16xf32> to vector<4x16xf32>
    %cst_36 = arith.constant dense<0.000000e+00> : vector<4x256xf32>
    %64 = tpu.matmul %63, %61, %cst_36 {dimension_numbers = #tpu.dot_dimension_numbers<[1], [0], [0], [1], [0, 0, 1, 1], [], []>} : vector<4x16xf32>, vector<16x256xf32>, vector<4x256xf32> -> vector<4x256xf32>
    %65 = arith.addf %60, %64 : vector<4x256xf32>
    %c0_37 = arith.constant 0 : index
    %c129 = arith.constant 129 : index
    %66 = vector.load %arg8[%c0_37, %c129] : memref<16x512xf32, #tpu.memory_space<vmem>>, vector<16x256xf32>
    %cst_38 = arith.constant 0.000000e+00 : f32
    %67 = vector.shape_cast %27 : vector<1x256xi1> to vector<1x256xi1>
    %68 = vector.broadcast %67 : vector<1x256xi1> to vector<16x256xi1>
    %69 = vector.broadcast %cst_38 : f32 to vector<16x256xf32>
    %70 = arith.select %68, %66, %69 : vector<16x256xi1>, vector<16x256xf32>
    %c5 = arith.constant 5 : index
    %c0_39 = arith.constant 0 : index
    %c0_40 = arith.constant 0 : index
    %71 = vector.load %arg2[%c5, %c0_39, %c0_40] : memref<9x4x16xf32, #tpu.memory_space<vmem>>, vector<1x4x16xf32>
    %72 = vector.shape_cast %71 : vector<1x4x16xf32> to vector<4x16xf32>
    %cst_41 = arith.constant dense<0.000000e+00> : vector<4x256xf32>
    %73 = tpu.matmul %72, %70, %cst_41 {dimension_numbers = #tpu.dot_dimension_numbers<[1], [0], [0], [1], [0, 0, 1, 1], [], []>} : vector<4x16xf32>, vector<16x256xf32>, vector<4x256xf32> -> vector<4x256xf32>
    %74 = arith.addf %65, %73 : vector<4x256xf32>
    %c0_42 = arith.constant 0 : index
    %c143 = arith.constant 143 : index
    %75 = vector.load %arg8[%c0_42, %c143] : memref<16x512xf32, #tpu.memory_space<vmem>>, vector<16x256xf32>
    %cst_43 = arith.constant 0.000000e+00 : f32
    %76 = vector.shape_cast %25 : vector<1x256xi1> to vector<1x256xi1>
    %77 = vector.broadcast %76 : vector<1x256xi1> to vector<16x256xi1>
    %78 = vector.broadcast %cst_43 : f32 to vector<16x256xf32>
    %79 = arith.select %77, %75, %78 : vector<16x256xi1>, vector<16x256xf32>
    %c6 = arith.constant 6 : index
    %c0_44 = arith.constant 0 : index
    %c0_45 = arith.constant 0 : index
    %80 = vector.load %arg2[%c6, %c0_44, %c0_45] : memref<9x4x16xf32, #tpu.memory_space<vmem>>, vector<1x4x16xf32>
    %81 = vector.shape_cast %80 : vector<1x4x16xf32> to vector<4x16xf32>
    %cst_46 = arith.constant dense<0.000000e+00> : vector<4x256xf32>
    %82 = tpu.matmul %81, %79, %cst_46 {dimension_numbers = #tpu.dot_dimension_numbers<[1], [0], [0], [1], [0, 0, 1, 1], [], []>} : vector<4x16xf32>, vector<16x256xf32>, vector<4x256xf32> -> vector<4x256xf32>
    %83 = arith.addf %74, %82 : vector<4x256xf32>
    %c0_47 = arith.constant 0 : index
    %c144 = arith.constant 144 : index
    %84 = vector.load %arg8[%c0_47, %c144] : memref<16x512xf32, #tpu.memory_space<vmem>>, vector<16x256xf32>
    %c7 = arith.constant 7 : index
    %c0_48 = arith.constant 0 : index
    %c0_49 = arith.constant 0 : index
    %85 = vector.load %arg2[%c7, %c0_48, %c0_49] : memref<9x4x16xf32, #tpu.memory_space<vmem>>, vector<1x4x16xf32>
    %86 = vector.shape_cast %85 : vector<1x4x16xf32> to vector<4x16xf32>
    %cst_50 = arith.constant dense<0.000000e+00> : vector<4x256xf32>
    %87 = tpu.matmul %86, %84, %cst_50 {dimension_numbers = #tpu.dot_dimension_numbers<[1], [0], [0], [1], [0, 0, 1, 1], [], []>} : vector<4x16xf32>, vector<16x256xf32>, vector<4x256xf32> -> vector<4x256xf32>
    %88 = arith.addf %83, %87 : vector<4x256xf32>
    %c0_51 = arith.constant 0 : index
    %c145 = arith.constant 145 : index
    %89 = vector.load %arg8[%c0_51, %c145] : memref<16x512xf32, #tpu.memory_space<vmem>>, vector<16x256xf32>
    %cst_52 = arith.constant 0.000000e+00 : f32
    %90 = vector.shape_cast %27 : vector<1x256xi1> to vector<1x256xi1>
    %91 = vector.broadcast %90 : vector<1x256xi1> to vector<16x256xi1>
    %92 = vector.broadcast %cst_52 : f32 to vector<16x256xf32>
    %93 = arith.select %91, %89, %92 : vector<16x256xi1>, vector<16x256xf32>
    %c8 = arith.constant 8 : index
    %c0_53 = arith.constant 0 : index
    %c0_54 = arith.constant 0 : index
    %94 = vector.load %arg2[%c8, %c0_53, %c0_54] : memref<9x4x16xf32, #tpu.memory_space<vmem>>, vector<1x4x16xf32>
    %95 = vector.shape_cast %94 : vector<1x4x16xf32> to vector<4x16xf32>
    %cst_55 = arith.constant dense<0.000000e+00> : vector<4x256xf32>
    %96 = tpu.matmul %95, %93, %cst_55 {dimension_numbers = #tpu.dot_dimension_numbers<[1], [0], [0], [1], [0, 0, 1, 1], [], []>} : vector<4x16xf32>, vector<16x256xf32>, vector<4x256xf32> -> vector<4x256xf32>
    %97 = arith.addf %88, %96 : vector<4x256xf32>
    %c0_56 = arith.constant 0 : index
    %c0_57 = arith.constant 0 : index
    %98 = vector.load %arg3[%c0_56, %c0_57] : memref<4x1xf32, #tpu.memory_space<vmem>>, vector<4x1xf32>
    %99 = vector.broadcast %98 : vector<4x1xf32> to vector<4x256xf32>
    %100 = arith.mulf %97, %99 : vector<4x256xf32>
    %c0_58 = arith.constant 0 : index
    %c0_59 = arith.constant 0 : index
    %101 = vector.load %arg4[%c0_58, %c0_59] : memref<4x1xf32, #tpu.memory_space<vmem>>, vector<4x1xf32>
    %102 = vector.broadcast %101 : vector<4x1xf32> to vector<4x256xf32>
    %103 = arith.addf %100, %102 : vector<4x256xf32>
    %cst_60 = arith.constant 0.000000e+00 : f32
    %104 = vector.broadcast %cst_60 : f32 to vector<4x256xf32>
    %105 = arith.maximumf %103, %104 : vector<4x256xf32>
    %c0_61 = arith.constant 0 : index
    %c0_62 = arith.constant 0 : index
    %106 = vector.load %arg5[%c0_61, %c0_62] : memref<4x4xf32, #tpu.memory_space<vmem>>, vector<4x4xf32>
    %cst_63 = arith.constant dense<0.000000e+00> : vector<4x256xf32>
    %107 = tpu.matmul %106, %105, %cst_63 {dimension_numbers = #tpu.dot_dimension_numbers<[1], [0], [0], [1], [0, 0, 1, 1], [], []>} : vector<4x4xf32>, vector<4x256xf32>, vector<4x256xf32> -> vector<4x256xf32>
    %c0_64 = arith.constant 0 : index
    %c0_65 = arith.constant 0 : index
    %108 = vector.load %arg6[%c0_64, %c0_65] : memref<4x1xf32, #tpu.memory_space<vmem>>, vector<4x1xf32>
    %109 = vector.broadcast %108 : vector<4x1xf32> to vector<4x256xf32>
    %110 = arith.addf %107, %109 : vector<4x256xf32>
    %c0_66 = arith.constant 0 : index
    %c0_67 = arith.constant 0 : index
    %c0_68 = arith.constant 0 : index
    %111 = vector.load %arg7[%c0_66, %c0_67, %c0_68] : memref<1x4x256xf32, #tpu.memory_space<vmem>>, vector<1x4x256xf32>
    %112 = vector.shape_cast %111 : vector<1x4x256xf32> to vector<4x256xf32>
    %113 = vector.shape_cast %110 : vector<4x256xf32> to vector<1x4x256xf32>
    tpu.vector_store %arg7[%c0_66, %c0_67, %c0_68], %113 {strides = array<i32>} : memref<1x4x256xf32, #tpu.memory_space<vmem>>, vector<1x4x256xf32>,
    return
  }
  func.func @transform_0(%arg0: i32) -> (i32, i32, i32) {
    %c0_i32 = arith.constant 0 : i32
    %c0_i32_0 = arith.constant 0 : i32
    %c0_i32_1 = arith.constant 0 : i32
    return %arg0, %c0_i32, %c0_i32_0 : i32, i32, i32
  }
  func.func @transform_1(%arg0: i32) -> (i32, i32, i32) {
    %c0_i32 = arith.constant 0 : i32
    %c0_i32_0 = arith.constant 0 : i32
    %c0_i32_1 = arith.constant 0 : i32
    %c0_i32_2 = arith.constant 0 : i32
    return %c0_i32, %c0_i32_0, %c0_i32_1 : i32, i32, i32
  }
  func.func @transform_2(%arg0: i32) -> (i32, i32) {
    %c0_i32 = arith.constant 0 : i32
    %c0_i32_0 = arith.constant 0 : i32
    %c0_i32_1 = arith.constant 0 : i32
    return %c0_i32, %c0_i32_0 : i32, i32
  }
  func.func @transform_3(%arg0: i32) -> (i32, i32) {
    %c0_i32 = arith.constant 0 : i32
    %c0_i32_0 = arith.constant 0 : i32
    %c0_i32_1 = arith.constant 0 : i32
    return %c0_i32, %c0_i32_0 : i32, i32
  }
  func.func @transform_4(%arg0: i32) -> (i32, i32) {
    %c0_i32 = arith.constant 0 : i32
    %c0_i32_0 = arith.constant 0 : i32
    %c0_i32_1 = arith.constant 0 : i32
    return %c0_i32, %c0_i32_0 : i32, i32
  }
  func.func @transform_5(%arg0: i32) -> (i32, i32) {
    %c0_i32 = arith.constant 0 : i32
    %c0_i32_0 = arith.constant 0 : i32
    %c0_i32_1 = arith.constant 0 : i32
    return %c0_i32, %c0_i32_0 : i32, i32
  }
  func.func @transform_6(%arg0: i32) -> (i32, i32, i32) {
    %c0_i32 = arith.constant 0 : i32
    %c0_i32_0 = arith.constant 0 : i32
    %c0_i32_1 = arith.constant 0 : i32
    return %arg0, %c0_i32, %c0_i32_0 : i32, i32, i32
  }
}

</mosaic_0001>

<bundles_post_ra>
// kernel: tpu_custom_call.1
= control target key start
LH: loop header
LB: loop body
LE: loop exit
PB: predicated region body
PF: predicated region fallthrough
CT: control target
= control target key end

     0   :  { %11 = vsyncpa [#allocation4], 0  ;;  %s2142_s0 = inlined_call_operand.hbm [shape: f32[2,16,256], index: 0, kind: input, shape index: {}]   ;;  %s2143_s1 = inlined_call_operand.hbm [shape: f32[9,4,16], index: 1, kind: input, shape index: {}]   ;;  %s2144_s2 = inlined_call_operand.vmem [shape: f32[4,1], index: 2, kind: input, shape index: {}]   ;;  %s2145_s3 = inlined_call_operand.vmem [shape: f32[4,1], index: 3, kind: input, shape index: {}]   ;;  %s2146_s4 = inlined_call_operand.vmem [shape: f32[4,4], index: 4, kind: input, shape index: {}]   ;;  %s2147_s5 = inlined_call_operand.vmem [shape: f32[4,1], index: 5, kind: input, shape index: {}]   ;;  %s2148_s6 = inlined_call_operand.hbm [shape: f32[2,4,256], index: 6, kind: output, shape index: {}]  }
   0x1   :  { %13 = vsyncpa [#allocation4 + $0x1], 0 }
   0x2   :  { %14 = vsyncpa [#allocation7], 0 }
   0x3   :  { %15 = vsyncpa [#allocation5], 0 }
   0x4   :  { %17 = vsyncpa [#allocation5 + $0x1], 0  ;;  %s1799_s21 = smov 0   ;;  %s1801_s22 = smov 0  }
   0x5   :  { %s1803_s23 = smov 0   ;;  %s1805_s24 = smov 0  }
   0x6 LB: > { %s1820_s25 = sadd.s32 4294967295, %s1745_s24   ;;  %s1456_s26 = sadd.s32 4294967294, %s1745_s24   ;;  %s1745_s24 = sphi %s1805_s24, %s2178_s24   ;;  %s1741_s23 = sphi %s1803_s23, %s2177_s23   ;;  %s1737_s22 = sphi %s1801_s22, %s2176_s22   ;;  %s1733_s21 = sphi %s1799_s21, %s2175_s21  }
   0x7   : > { %p43_p0 = scmp.ne.s32.totalorder %s1737_s22, %s1733_s21  ;;  %p2149_p1 = scmp.eq.s32.totalorder %s1820_s25, 0 }
   0x8   : > { %p178_p3 = scmp.eq.s32.totalorder %s1456_s26, 1  ;;  %p1457_p5 = scmp.ge.s32.totalorder %s1745_s24, 1 }
   0x9   : > { %p1829_p4 = por %p2149_p1, %p43_p0  ;;  %p185_p7 = scmp.lt.s32.totalorder %s1745_s24, 3 }
   0xa   : > { %p1834_p6 = por %p178_p3, %p43_p0  ;;  %s1747_s30 = smov [#allocation6]  }
   0xb   : > { %s2153_s27 = scalar_select %p1829_p4, 1, 0 }
   0xc   : > { %s2154_s28 = scalar_select %p1834_p6, 1, 0 }
   0xd   : > { %p1839_p8 = pnand %p1457_p5, %p185_p7  ;;  %s197_s7 = sshll.u32 %s1747_s30, 4  ;;  %s198_s7 = int_to_ptr.vmem [resolvable:$true] %s197_s7 }
   0xe   : > { %s1853_s9 = sadd.s32 1, %s1745_s24   ;;  %s30_s10 = sadd.s32 1, %s1741_s23 }
   0xf   : > { %s2155_s29 = scalar_select %p1839_p8, 1, 0 }
  0x10   : > { %p1518_p9 = pneg %p1839_p8  ;;  %s27_s11 = ssub.s32 %s1745_s24, %s1853_s9 }
  0x11   : > { %s1634_s12 = scalar_lea.vmem %s198_s7, 576  ;;  %p1642_p5 = scmp.lt.s32.totalorder %s198_s7, %s198_s7 }
  0x12   : > { %p1848_p11 = pnand %p1518_p9, %p2149_p1  ;;  %p1635_p13 = scmp.ne.s32.totalorder %s198_s7, %s1634_s12 }
  0x13   : > { %p1643_p7 = scmp.lt.s32.totalorder %s1634_s12, %s1634_s12 }
  0x14   : > { %p1625_p12 = pneg %p1848_p11 }
  0x15   : > { %p1644_p10 = por %p1643_p7, %p1642_p5 }
  0x16   : > { %p1637_p0 = pnand %p1635_p13, %p1625_p12 }
  0x18   : > { %p1638_p3 = pneg %p1637_p0 }
  0x1a   : > { %p1645_p2 = pnand %p1644_p10, %p1638_p3 }
  0x1c   : > { %1648 = shalt.err (!%p1645_p2)
}
  0x1d   : > { %s1748_s13 = smov 64   ;;  %s1749_s14 = smov 4  }
  0x1e   : > { %1521 = dma.hbm_to_vmem [thread:$0]  (!%p1848_p11), %s2143_s1, 576, %s198_s7, [#allocation7], %s1748_s13, %s1748_s13, %s1749_s14  }
  0x1f   : > { %p28_p9 = scmp.eq.s32.totalorder %s27_s11, 0  ;;  %p37_p12 = scmp.ne.s32.totalorder %s1741_s23, %s1737_s22 }
  0x20   : > { %p38_p10 = scmp.eq.s32.totalorder %s1745_s24, 0  ;;  %p1531_p2 = scmp.lt.s32.totalorder %s1745_s24, 2 }
  0x21   : > { %s1870_s17 = scalar_select %p28_p9, %s1741_s23, %s30_s10  }
  0x22   : > { %p39_p13 = por %p38_p10, %p37_p12  ;;  %p2157_p0 = scmp.eq.s32.totalorder %s1820_s25, 1 }
  0x23   : > { %s223_s19 = sand.u32 1, %s1741_s23   ;;  %s1508_s20 = sshll.u32 %s1745_s24, 9 }
  0x24   : > { %p1874_p3 = por %p2157_p0, %p37_p12  ;;  %s1460_s26 = sshll.u32 %s223_s19, 5 }
  0x25   : > { %s1883_s12 = scalar_lea.hbm %s2142_s0, %s1508_s20  ;;  %s227_s7 = scalar_lea.vmem [#allocation3], %s1460_s26 }
  0x26   : > { %s2158_s18 = scalar_select %p1874_p3, 1, 0 }
  0x27   : > { %s234_s10 = sshll.u32 %s227_s7, 4  ;;  %p1885_p11 = pnand %p1531_p2, %p39_p13  ;;  %s1889_s10 = int_to_ptr.vmem [resolvable:$true] %s234_s10 }
  0x28   : > { %s1891_s13 = scalar_lea.sflag [#allocation4], %s223_s19  ;;  %s1649_s14 = scalar_lea.hbm %s1883_s12, 512 }
  0x29   : > { %p1650_p5 = scmp.ne.s32.totalorder %s1883_s12, %s1649_s14  ;;  %p1651_p7 = pneg %p1885_p11 }
  0x2a   : > { %s1654_s20 = scalar_lea.hbm %s2142_s0, 1024  ;;  %p1655_p10 = scmp.lt.s32.totalorder %s1883_s12, %s2142_s0 }
  0x2b   : > { %p1652_p9 = pnand %p1651_p7, %p1650_p5  ;;  %p1656_p2 = scmp.lt.s32.totalorder %s1654_s20, %s1649_s14 }
  0x2d   : > { %p1653_p12 = pneg %p1652_p9  ;;  %p1657_p13 = por %p1656_p2, %p1655_p10 }
  0x2f   : > { %p1658_p0 = pnand %p1657_p13, %p1653_p12 }
  0x31   : > { %1661 = shalt.err (!%p1658_p0)
}
  0x32   : > { %s1662_s19 = scalar_lea.vmem %s1889_s10, 512  ;;  %s1750_s8 = smov [#allocation3]  }
  0x33   : > { %p1663_p1 = scmp.ne.s32.totalorder %s1889_s10, %s1662_s19  ;;  %s1667_s7 = sshll.u32 %s1750_s8, 4  ;;  %s1668_s7 = int_to_ptr.vmem [resolvable:$false] %s1667_s7 }
  0x34   : > { %s1669_s15 = scalar_lea.vmem %s1668_s7, 1024  ;;  %p1670_p9 = scmp.lt.s32.totalorder %s1889_s10, %s1668_s7 }
  0x35   : > { %p1665_p6 = pnand %p1663_p1, %p1651_p7  ;;  %p1671_p3 = scmp.lt.s32.totalorder %s1669_s15, %s1662_s19 }
  0x37   : > { %p1666_p5 = pneg %p1665_p6  ;;  %p1672_p4 = por %p1671_p3, %p1670_p9 }
  0x39   : > { %p1673_p8 = pnand %p1672_p4, %p1666_p5 }
  0x3b   : > { %1676 = shalt.err (!%p1673_p8)
}
  0x3c   : > { %s1751_s14 = smov 256   ;;  %s1752_s16 = smov 16  }
  0x3d   : > { %1525 = dma.hbm_to_vmem [thread:$0]  (!%p1885_p11), %s1883_s12, 512, %s1889_s10, %s1891_s13, %s1751_s14, %s1751_s14, %s1752_s16  }
  0x3e   : > { %p2160_p1 = scmp.ne.s32.totalorder %s2155_s29, 0 }
  0x3f   : > { %s1915_s20 = sand.u32 (!%p2160_p1), 1, %s1737_s22   ;;  %p2161_p4 = scmp.ne.s32.totalorder (!%p2160_p1), %s2153_s27, 0 }
  0x40   : > { %246 = sbr.rel (%p2160_p1) target bundleno = 686 (0x2ae), region = 44  ;;  %s1464_s26 = sshll.u32 (!%p2160_p1), %s1915_s20, 5 }
  0x41   : > { %s249_s30 = scalar_lea.sflag (!%p2160_p1), [#allocation4], %s1915_s20  ;;  %s252_s19 = scalar_lea.vmem (!%p2160_p1), [#allocation3], %s1464_s26 }
  0x45   : > { %1720 = dma.done.wait (%p2161_p4), %s249_s30, 512  }
  0x46   : > { %1722 = vsyncadd (%p2161_p4), %s249_s30, 4294966784  ;;  %p2162_p6 = scmp.eq.s32.totalorder %s1820_s25, 0 }
  0x48   : > { %1724 = dma.done.wait (%p2162_p6), [#allocation7], 576   ;;  %p2163_p8 = pmov %p2162_p6 }
  0x49   : > { %v1753_v0 = vmov 0.0   ;;  %s1754_s29 = smov 16   ;;  %v1930_v1 = vld [vmem:[%s252_s19 + $0x10] sm:$0xff]  ;;  %s1755_s12 = smov 17   ;;  %v1934_v2 = vld [vmem:[%s252_s19 + $0x18] sm:$0xff]  ;;  %v1936_v3 = vld [vmem:[%s252_s19] sm:$0xff]  ;;  %v297_v9 = vlaneseq }
  0x4a   : > { %1726 = vsyncadd (%p2163_p8), [#allocation7], 4294966720  ;;  %460 = vmatprep.mubr.f32.mxu0 %v1753_v0  ;;  %534 = vmatprep.mubr.f32.mxu1 %v1753_v0  ;;  %v1942_v4 = vld [vmem:[%s252_s19 + $0x8] sm:$0xff]  ;;  %s1756_s27 = smov 15   ;;  %s1757_s10 = smov 1   ;;  %v1762_v5 = vmov 0  }
  0x4b   : > { %1582 = vrot.lane.b32.xlu1 %v1753_v0, %s1754_s29  ;;  %380 = vrot.lane.b32.xlu0 %v1930_v1, %s1754_s29  ;;  %s1758_s11 = smov 127   ;;  %s1759_s13 = smov 113   ;;  %v1257_v6 = vld [vmem:[%s2145_s3] sm:$0xf]  ;;  %v298_v11 = vand.u32 127, %v297_v9  ;;  %vm384_vm0 = vcmask 130048  }
  0x4c   : > { %s1760_s8 = smov 112   ;;  %s1761_s7 = smov 111   ;;  %1622 = vset.pattern.permute.xlu1 %v1762_v5  ;;  %1621 = vset.pattern.permute.xlu0 %v1762_v5  ;;  %v1249_v7 = vld [vmem:[%s2144_s2] sm:$0xf]  ;;  %vm356_vm1 = vcmask 138240   ;;  %vm557_vm4 = vcmask 121856  }
  0x4d   : > { %v1268_v8 = vld [vmem:[%s2147_s5] sm:$0xf]  ;;  %v299_v12 = vadd.s32 128, %v298_v11  ;;  %v304_v20 = vand.u32 15, %v298_v11  ;;  %v371_v34 = vld [vmem:[#allocation6 + $0x4] sm:$0xf] }
  0x4e   : > { %v369_v40 = vld [vmem:[#allocation6] sm:$0xf]  ;;  %v571_v54 = vld [vmem:[#allocation6 + $0x8] sm:$0xf]  ;;  %vm660_vm7 = vcmask 7168   ;;  %vm853_vm8 = vcmask 1039360  }
  0x4f   : > { %352 = vrot.lane.b32.xlu1 %v1930_v1, %s1755_s12  ;;  %382 = vrot.lane.b32.xlu0 %v1934_v2, %s1754_s29  ;;  %v311_v16 = vand.u32 15, %v299_v12  ;;  %vm1993_vm3 = vcmp.ge.s32.totalorder %v304_v20, 1  ;;  %vm2021_vm6 = vcmp.le.s32.totalorder %v304_v20, 14  ;;  %v752_v61 = vld [vmem:[#allocation6 + $0x10] sm:$0xf]  ;;  %vm956_vm9 = vcmask 924672  }
  0x50   : > { %vm1061_vm10 = vcmask 916480   ;;  %vm1158_vm11 = vcmask 908288   ;;  %vm1278_vm12 = vcmask 1043456   ;;  %vm1274_vm13 = vcmask 31744   ;;  %s1362_s14 = scalar_lea.sflag [#allocation5], %s1915_s20  ;;  %p2172_p11 = scmp.ne.s32.totalorder %s2158_s18, 0 }
  0x51   : > { %vm1988_vm2 = vcmp.ge.s32.totalorder %v311_v16, 1  ;;  %vm2012_vm5 = vcmp.le.s32.totalorder %v311_v16, 14  ;;  %s1763_s26 = smov [#allocation8]  }
  0x52   : > { %s1681_s30 = sshll.u32 %s1763_s26, 4  ;;  %s1682_s30 = int_to_ptr.vmem [resolvable:$false] %s1681_s30 }
  0x53   : > { %374 = vrot.lane.b32.xlu1 %v1936_v3, %s1754_s29  ;;  %354 = vrot.lane.b32.xlu0 %v1934_v2, %s1755_s12 }
  0x57   : > { %1587 = vrot.lane.b32.xlu1 %v1753_v0, %s1755_s12  ;;  %376 = vrot.lane.b32.xlu0 %v1942_v4, %s1754_s29 }
  0x5b   : > { %348 = vrot.lane.b32.xlu1 %v1942_v4, %s1755_s12  ;;  %346 = vrot.lane.b32.xlu0 %v1936_v3, %s1755_s12 }
  0x5f   : > { %555 = vrot.lane.b32.xlu1 %v1934_v2, %s1756_s27  ;;  %553 = vrot.lane.b32.xlu0 %v1930_v1, %s1756_s27 }
  0x63   : > { %547 = vrot.lane.b32.xlu1 %v1936_v3, %s1756_s27  ;;  %1592 = vrot.lane.b32.xlu0 %v1753_v0, %s1756_s27 }
  0x67   : > { %656 = vrot.lane.b32.xlu1 %v1930_v1, %s1757_s10  ;;  %549 = vrot.lane.b32.xlu0 %v1942_v4, %s1756_s27  ;;  %s1466_s27 = sshll.u32 %s1915_s20, 3 }
  0x6b   : > { %1597 = vrot.lane.b32.xlu1 %v1753_v0, %s1757_s10  ;;  %658 = vrot.lane.b32.xlu0 %v1934_v2, %s1757_s10 }
  0x6f   : > { %652 = vrot.lane.b32.xlu1 %v1942_v4, %s1757_s10  ;;  %650 = vrot.lane.b32.xlu0 %v1936_v3, %s1757_s10  ;;  %s1509_s10 = sshll.u32 %s1820_s25, 7  ;;  %s1683_s25 = scalar_lea.vmem %s1682_s30, 256 }
  0x70   : > { %s1374_s15 = scalar_lea.hbm %s2148_s6, %s1509_s10 }
  0x73   : > { %1602 = vrot.lane.b32.xlu1 %v1753_v0, %s1758_s11  ;;  %849 = vrot.lane.b32.xlu0 %v1934_v2, %s1758_s11 }
  0x77   : > { %843 = vrot.lane.b32.xlu1 %v1942_v4, %s1758_s11  ;;  %847 = vrot.lane.b32.xlu0 %v1930_v1, %s1758_s11 }
  0x7b   : > { %1607 = vrot.lane.b32.xlu1 %v1753_v0, %s1759_s13  ;;  %952 = vrot.lane.b32.xlu0 %v1934_v2, %s1759_s13 }
  0x7f   : > { %950 = vrot.lane.b32.xlu1 %v1930_v1, %s1759_s13  ;;  %841 = vrot.lane.b32.xlu0 %v1936_v3, %s1758_s11  ;;  %s284_s11 = scalar_lea.vmem [#allocation8], %s1466_s27 }
  0x83   : > { %1057 = vrot.lane.b32.xlu1 %v1934_v2, %s1760_s8  ;;  %946 = vrot.lane.b32.xlu0 %v1942_v4, %s1759_s13 }
  0x87   : > { %944 = vrot.lane.b32.xlu1 %v1936_v3, %s1759_s13  ;;  %1612 = vrot.lane.b32.xlu0 %v1753_v0, %s1760_s8  ;;  %s1376_s13 = sshll.u32 %s284_s11, 4  ;;  %s1377_s13 = int_to_ptr.vmem [resolvable:$true] %s1376_s13 }
  0x88   : > { %s1677_s16 = scalar_lea.vmem %s1377_s13, 128  ;;  %p1684_p10 = scmp.lt.s32.totalorder %s1377_s13, %s1682_s30 }
  0x89   : > { %p1678_p3 = scmp.ne.s32.totalorder %s1377_s13, %s1677_s16  ;;  %p1685_p2 = scmp.lt.s32.totalorder %s1683_s25, %s1677_s16 }
  0x8b   : > { %1051 = vrot.lane.b32.xlu1 %v1942_v4, %s1760_s8  ;;  %1055 = vrot.lane.b32.xlu0 %v1930_v1, %s1760_s8  ;;  %p1679_p7 = pnand %p1678_p3, %p2172_p11  ;;  %p1686_p13 = por %p1685_p2, %p1684_p10 }
  0x8d   : > { %p1680_p12 = pneg %p1679_p7 }
  0x8f   : > { %1617 = vrot.lane.b32.xlu1 %v1753_v0, %s1761_s7  ;;  %1154 = vrot.lane.b32.xlu0 %v1934_v2, %s1761_s7  ;;  %p1687_p0 = pnand %p1686_p13, %p1680_p12 }
  0x93   : > { %1152 = vrot.lane.b32.xlu1 %v1930_v1, %s1761_s7  ;;  %1049 = vrot.lane.b32.xlu0 %v1936_v3, %s1760_s8 }
  0x97   : > { %1146 = vrot.lane.b32.xlu1 %v1936_v3, %s1761_s7  ;;  %1148 = vrot.lane.b32.xlu0 %v1942_v4, %s1761_s7 }
  0x9b   : > { %1260 = vperm.xlu1 %1622, %v1257_v6   ;;  %1252 = vperm.xlu0 %1621, %v1249_v7   ;;  %v674_v7 = vld [vmem:[#allocation6 + $0xc] sm:$0xf] }
  0x9f   : > { %1271 = vperm.xlu1 %1622, %v1268_v8  }
  0xbd   : > { %v1583_v10 = vpop.permute.xlu1 %1582  ;;  %v381_v14 = vpop.permute.xlu0 %380 }
  0xbe   : > { %v1584_v15 = vunpack.i.l.bf16 %v1583_v10  ;;  %v1585_v28 = vunpack.i.h.bf16 %v1583_v10 }
  0xc0   : > { %v387_v21 = vsel %vm384_vm0, %v1584_v15, %v381_v14 }
  0xc1   : > { %v353_v13 = vpop.permute.xlu1 %352  ;;  %v383_v17 = vpop.permute.xlu0 %382 }
  0xc2   : > { %v388_v19 = vsel %vm384_vm0, %v381_v14, %v383_v17 }
  0xc3   : > { %424 = vmatprep.subr.mxu0 %v388_v19 }
  0xc4   : > { %425 = vmatpush1.msra.mxu0 %v387_v21  ;;  %v867_v21 = vld [vmem:[#allocation6 + $0x14] sm:$0xf] }
  0xc5   : > { %v375_v18 = vpop.permute.xlu1 %374  ;;  %v355_v23 = vpop.permute.xlu0 %354 }
  0xc6   : > { %v360_v26 = vsel %vm356_vm1, %v353_v13, %v355_v23  ;;  %v385_v35 = vsel %vm384_vm0, %v1585_v28, %v375_v18 }
  0xc7   : > { %1468 = vmatprep.subr.msk.mxu1 %vm1988_vm2, %v360_v26 }
  0xc9   : > { %v1588_v24 = vpop.permute.xlu1 %1587  ;;  %v377_v30 = vpop.permute.xlu0 %376 }
  0xca   : > { %v1589_v25 = vunpack.i.l.bf16 %v1588_v24  ;;  %v1590_v32 = vunpack.i.h.bf16 %v1588_v24  ;;  %v386_v33 = vsel %vm384_vm0, %v375_v18, %v377_v30  ;;  %v970_v30 = vld [vmem:[#allocation6 + $0x18] sm:$0xf] }
  0xcb   : > { %426 = vmatprep.subr.mxu0 %v386_v33 }
  0xcc   : > { %v359_v29 = vsel %vm356_vm1, %v1589_v25, %v353_v13  ;;  %427 = vmatpush1.msra.mxu0 %v385_v35 }
  0xcd   : > { %v349_v31 = vpop.permute.xlu1 %348  ;;  %1469 = vmatpush1.msk.msra.mxu1 %vm1993_vm3, %v359_v29  ;;  %v347_v36 = vpop.permute.xlu0 %346  ;;  %1467 = vmatmul.mubr.msk.f32.vlgmr.msra.gmra.mxu0 %vm384_vm0, %v371_v34 }
  0xce   : > { %v357_v38 = vsel %vm356_vm1, %v1590_v32, %v347_v36  ;;  %v358_v39 = vsel %vm356_vm1, %v347_v36, %v349_v31  ;;  %639 = vmatprep.mubr.f32.mxu0 %v1753_v0 }
  0xcf   : > { %1470 = vmatprep.subr.msk.mxu1 %vm1988_vm2, %v358_v39 }
  0xd0   : > { %1471 = vmatpush1.msk.msra.mxu1 %vm1993_vm3, %v357_v38 }
  0xd1   : > { %v556_v37 = vpop.permute.xlu1 %555  ;;  %v554_v42 = vpop.permute.xlu0 %553  ;;  %1472 = vmatmul.mubr.msk.f32.vlgmr.msra.gmra.mxu1 %vm384_vm0, %v369_v40 }
  0xd2   : > { %v561_v44 = vsel %vm557_vm4, %v554_v42, %v556_v37  ;;  %742 = vmatprep.mubr.f32.mxu1 %v1753_v0 }
  0xd3   : > { %1473 = vmatprep.subr.msk.mxu0 %vm2012_vm5, %v561_v44 }
  0xd5   : > { %v548_v43 = vpop.permute.xlu1 %547  ;;  %v1593_v45 = vpop.permute.xlu0 %1592 }
  0xd6   : > { %v1594_v47 = vunpack.i.l.bf16 %v1593_v45  ;;  %v1595_v49 = vunpack.i.h.bf16 %v1593_v45  ;;  %v1048_v45 = vld [vmem:[#allocation6 + $0x1c] sm:$0xf] }
  0xd8   : > { %v560_v50 = vsel %vm557_vm4, %v1594_v47, %v554_v42  ;;  %v558_v56 = vsel %vm557_vm4, %v1595_v49, %v548_v43 }
  0xd9   : > { %v657_v46 = vpop.permute.xlu1 %656  ;;  %v550_v51 = vpop.permute.xlu0 %549  ;;  %1474 = vmatpush1.msk.msra.mxu0 %vm2021_vm6, %v560_v50 }
  0xda   : > { %v559_v53 = vsel %vm557_vm4, %v548_v43, %v550_v51 }
  0xdb   : > { %1475 = vmatprep.subr.msk.mxu0 %vm2012_vm5, %v559_v53  ;;  %v1172_v53 = vld [vmem:[#allocation6 + $0x20] sm:$0xf] }
  0xdc   : > { %1476 = vmatpush1.msk.msra.mxu0 %vm2021_vm6, %v558_v56 }
  0xdd   : > { %v1598_v52 = vpop.permute.xlu1 %1597  ;;  %v659_v57 = vpop.permute.xlu0 %658  ;;  %784 = vmatprep.subr.mxu0 %v1934_v2  ;;  %1477 = vmatmul.mubr.msk.f32.vlgmr.msra.gmra.mxu0 %vm384_vm0, %v571_v54 }
  0xde   : > { %v1599_v55 = vunpack.i.l.bf16 %v1598_v52  ;;  %v1600_v59 = vunpack.i.h.bf16 %v1598_v52  ;;  %v664_v60 = vsel %vm660_vm7, %v657_v46, %v659_v57  ;;  %785 = vmatpush1.msra.mxu0 %v1930_v1  ;;  %820 = vmatprep.mubr.f32.mxu0 %v1753_v0 }
  0xdf   : > { %1478 = vmatprep.subr.msk.mxu1 %vm1988_vm2, %v664_v60  ;;  %786 = vmatprep.subr.mxu0 %v1942_v4 }
  0xe0   : > { %v663_v62 = vsel %vm660_vm7, %v1599_v55, %v657_v46  ;;  %787 = vmatpush1.msra.mxu0 %v1936_v3 }
  0xe1   : > { %v653_v58 = vpop.permute.xlu1 %652  ;;  %1479 = vmatpush1.msk.msra.mxu1 %vm1993_vm3, %v663_v62  ;;  %v651_v63 = vpop.permute.xlu0 %650  ;;  %1483 = vmatmul.mubr.msk.f32.vlgmr.msra.gmra.mxu0 %vm384_vm0, %v752_v61 }
  0xe2   : > { %v661_v1 = vsel %vm660_vm7, %v1600_v59, %v651_v63  ;;  %v662_v5 = vsel %vm660_vm7, %v651_v63, %v653_v58  ;;  %1038 = vmatprep.mubr.f32.mxu0 %v1753_v0 }
  0xe3   : > { %1480 = vmatprep.subr.msk.mxu1 %vm1988_vm2, %v662_v5 }
  0xe4   : > { %1481 = vmatpush1.msk.msra.mxu1 %vm1993_vm3, %v661_v1 }
  0xe5   : > { %v1603_v2 = vpop.permute.xlu1 %1602  ;;  %v850_v3 = vpop.permute.xlu0 %849  ;;  %1482 = vmatmul.mubr.msk.f32.vlgmr.msra.gmra.mxu1 %vm384_vm0, %v674_v7 }
  0xe6   : > { %v1604_v6 = vunpack.i.l.bf16 %v1603_v2  ;;  %935 = vmatprep.mubr.f32.mxu1 %v1753_v0  ;;  %v1605_v9 = vunpack.i.h.bf16 %v1603_v2 }
  0xe8   : > { %v857_v8 = vsel %vm853_vm8, %v850_v3, %v1604_v6 }
  0xe9   : > { %v844_v4 = vpop.permute.xlu1 %843  ;;  %1484 = vmatprep.subr.msk.mxu1 %vm2012_vm5, %v857_v8  ;;  %v848_v10 = vpop.permute.xlu0 %847 }
  0xea   : > { %v856_v12 = vsel %vm853_vm8, %v848_v10, %v850_v3  ;;  %v855_v14 = vsel %vm853_vm8, %v844_v4, %v1605_v9 }
  0xeb   : > { %1485 = vmatpush1.msk.msra.mxu1 %vm2021_vm6, %v856_v12 }
  0xec   : > { %1486 = vmatprep.subr.msk.mxu1 %vm2012_vm5, %v855_v14 }
  0xed   : > { %v1608_v11 = vpop.permute.xlu1 %1607  ;;  %v953_v15 = vpop.permute.xlu0 %952 }
  0xee   : > { %v1609_v13 = vunpack.i.l.bf16 %v1608_v11  ;;  %v1610_v24 = vunpack.i.h.bf16 %v1608_v11 }
  0xf0   : > { %v960_v17 = vsel %vm956_vm9, %v953_v15, %v1609_v13 }
  0xf1   : > { %v951_v16 = vpop.permute.xlu1 %950  ;;  %1489 = vmatprep.subr.msk.mxu0 %vm1988_vm2, %v960_v17  ;;  %v842_v19 = vpop.permute.xlu0 %841 }
  0xf2   : > { %v959_v18 = vsel %vm956_vm9, %v951_v16, %v953_v15  ;;  %v854_v23 = vsel %vm853_vm8, %v842_v19, %v844_v4 }
  0xf3   : > { %1490 = vmatpush1.msk.msra.mxu0 %vm1993_vm3, %v959_v18  ;;  %1487 = vmatpush1.msk.msra.mxu1 %vm2021_vm6, %v854_v23 }
  0xf4   : > { %1488 = vmatmul.mubr.msk.f32.vlgmr.msra.gmra.mxu1 %vm384_vm0, %v867_v21 }
  0xf5   : > { %v1058_v20 = vpop.permute.xlu1 %1057  ;;  %v947_v25 = vpop.permute.xlu0 %946  ;;  %1137 = vmatprep.mubr.f32.mxu1 %v1753_v0 }
  0xf6   : > { %v958_v28 = vsel %vm956_vm9, %v947_v25, %v1610_v24 }
  0xf7   : > { %1491 = vmatprep.subr.msk.mxu0 %vm1988_vm2, %v958_v28 }
  0xf9   : > { %v945_v26 = vpop.permute.xlu1 %944  ;;  %v1613_v31 = vpop.permute.xlu0 %1612 }
  0xfa   : > { %v957_v29 = vsel %vm956_vm9, %v945_v26, %v947_v25  ;;  %v1614_v33 = vunpack.i.l.bf16 %v1613_v31  ;;  %v1615_v34 = vunpack.i.h.bf16 %v1613_v31 }
  0xfb   : > { %1492 = vmatpush1.msk.msra.mxu0 %vm1993_vm3, %v957_v29 }
  0xfc   : > { %1493 = vmatmul.mubr.msk.f32.vlgmr.msra.gmra.mxu0 %vm384_vm0, %v970_v30  ;;  %v1065_v35 = vsel %vm1061_vm10, %v1058_v20, %v1614_v33 }
  0xfd   : > { %v1052_v32 = vpop.permute.xlu1 %1051  ;;  %1240 = vmatprep.mubr.f32.mxu0 %v1753_v0  ;;  %v1056_v36 = vpop.permute.xlu0 %1055  ;;  %1101 = vmatprep.subr.mxu1 %v1065_v35 }
  0xfe   : > { %v1064_v22 = vsel %vm1061_vm10, %v1056_v36, %v1058_v20  ;;  %v1063_v27 = vsel %vm1061_vm10, %v1052_v32, %v1615_v34 }
  0xff   : > { %1102 = vmatpush1.msra.mxu1 %v1064_v22 }
 0x100   : > { %1103 = vmatprep.subr.mxu1 %v1063_v27 }
 0x101   : > { %v1618_v37 = vpop.permute.xlu1 %1617  ;;  %v1155_v39 = vpop.permute.xlu0 %1154 }
 0x102   : > { %v1619_v38 = vunpack.i.l.bf16 %v1618_v37  ;;  %v1620_v49 = vunpack.i.h.bf16 %v1618_v37 }
 0x104   : > { %v1162_v42 = vsel %vm1158_vm11, %v1155_v39, %v1619_v38 }
 0x105   : > { %v1153_v40 = vpop.permute.xlu1 %1152  ;;  %1495 = vmatprep.subr.msk.mxu0 %vm2012_vm5, %v1162_v42  ;;  %v1050_v44 = vpop.permute.xlu0 %1049 }
 0x106   : > { %v1161_v43 = vsel %vm1158_vm11, %v1153_v40, %v1155_v39  ;;  %v1062_v46 = vsel %vm1061_vm10, %v1050_v44, %v1052_v32  ;;  %v1267_v32 = vld [vmem:[%s2146_s4] sm:$0xf] }
 0x107   : > { %1496 = vmatpush1.msk.msra.mxu0 %vm2021_vm6, %v1161_v43  ;;  %1104 = vmatpush1.msra.mxu1 %v1062_v46 }
 0x108   : > { %1494 = vmatmul.mubr.msk.f32.vlgmr.msra.gmra.mxu1 %vm384_vm0, %v1048_v45 }
 0x109   : > { %v1147_v47 = vpop.permute.xlu1 %1146  ;;  %v1149_v50 = vpop.permute.xlu0 %1148  ;;  %1349 = vmatprep.mubr.f32.mxu1 %v1753_v0 }
 0x10a   : > { %v1160_v51 = vsel %vm1158_vm11, %v1149_v50, %v1620_v49  ;;  %v1159_v52 = vsel %vm1158_vm11, %v1147_v47, %v1149_v50 }
 0x10b   : > { %1497 = vmatprep.subr.msk.mxu0 %vm2012_vm5, %v1160_v51 }
 0x10c   : > { %1498 = vmatpush1.msk.msra.mxu0 %vm2021_vm6, %v1159_v52 }
 0x10d   : > { %1499 = vmatmul.mubr.msk.f32.vlgmr.msra.gmra.mxu0 %vm384_vm0, %v1172_v53 }
 0x116   : > { %v1253_v18 = vpop.permute.xlu0 %1252  ;;  %v1261_v25 = vpop.permute.xlu1 %1260 }
 0x11a   : > { %v1272_v34 = vpop.permute.xlu1 %1271 }
 0x18d   : > { %v462_v54 = vpop.f32.mrf.mxu0 }
 0x18f   : > { %v464_v55 = vpop.f32.mrf.mxu0 }
 0x191   : > { %v536_v56 = vpop.f32.mrf.mxu1 }
 0x192   : > { %v537_v59 = vadd.f32 %v536_v56, %v462_v54 }
 0x193   : > { %v538_v57 = vpop.f32.mrf.mxu1 }
 0x194   : > { %v539_v0 = vadd.f32 %v538_v57, %v464_v55 }
 0x19d   : > { %v641_v58 = vpop.f32.mrf.mxu0 }
 0x19e   : > { %v646_v62 = vadd.f32 %v641_v58, %v537_v59 }
 0x19f   : > { %v643_v60 = vpop.f32.mrf.mxu0 }
 0x1a0   : > { %v647_v63 = vadd.f32 %v643_v60, %v539_v0 }
 0x1a1   : > { %v822_v1 = vpop.f32.mrf.mxu0 }
 0x1a3   : > { %v824_v6 = vpop.f32.mrf.mxu0 }
 0x1a5   : > { %v744_v61 = vpop.f32.mrf.mxu1 }
 0x1a6   : > { %v749_v41 = vadd.f32 %v744_v61, %v646_v62 }
 0x1a7   : > { %v746_v2 = vpop.f32.mrf.mxu1 }
 0x1a8   : > { %v750_v5 = vadd.f32 %v746_v2, %v647_v63  ;;  %v827_v7 = vadd.f32 %v822_v1, %v749_v41 }
 0x1aa   : > { %v828_v3 = vadd.f32 %v824_v6, %v750_v5 }
 0x1b4   : > { %v937_v48 = vpop.f32.mrf.mxu1 }
 0x1b5   : > { %v942_v9 = vadd.f32 %v937_v48, %v827_v7 }
 0x1b6   : > { %v939_v4 = vpop.f32.mrf.mxu1 }
 0x1b7   : > { %v943_v10 = vadd.f32 %v939_v4, %v828_v3 }
 0x1bc   : > { %v1040_v8 = vpop.f32.mrf.mxu0 }
 0x1bd   : > { %v1045_v12 = vadd.f32 %v1040_v8, %v942_v9 }
 0x1be   : > { %v1042_v11 = vpop.f32.mrf.mxu0 }
 0x1bf   : > { %v1046_v14 = vadd.f32 %v1042_v11, %v943_v10 }
 0x1c8   : > { %v1139_v13 = vpop.f32.mrf.mxu1 }
 0x1c9   : > { %v1144_v16 = vadd.f32 %v1139_v13, %v1045_v12 }
 0x1ca   : > { %v1141_v15 = vpop.f32.mrf.mxu1 }
 0x1cb   : > { %v1145_v19 = vadd.f32 %v1141_v15, %v1046_v14 }
 0x1cd   : > { %v1242_v17 = vpop.f32.mrf.mxu0 }
 0x1ce   : > { %v1247_v20 = vadd.f32 %v1242_v17, %v1144_v16 }
 0x1cf   : > { %v1244_v21 = vpop.f32.mrf.mxu0 }
 0x1d0   : > { %v1255_v23 = vmul.f32 %v1253_v18, %v1247_v20  ;;  %v1248_v24 = vadd.f32 %v1244_v21, %v1145_v19 }
 0x1d2   : > { %v1256_v26 = vmul.f32 %v1253_v18, %v1248_v24  ;;  %v1263_v28 = vadd.f32 %v1261_v25, %v1255_v23 }
 0x1d4   : > { %v1264_v29 = vadd.f32 %v1261_v25, %v1256_v26  ;;  %v1265_v31 = vmax.f32 %v1263_v28, 0.0 }
 0x1d6   : > { %v1266_v30 = vmax.f32 %v1264_v29, 0.0 }
 0x1d8   : > { %1500 = vmatprep.subr.msk.mxu1 %vm1278_vm12, %v1266_v30 }
 0x1d9   : > { %1501 = vmatpush1.msk.msra.mxu1 %vm1278_vm12, %v1265_v31 }
 0x1da   : > { %1502 = vmatmul.mubr.msk.f32.vlgmr.msra.gmra.mxu1 %vm1274_vm13, %v1267_v32 }
 0x29a   : > { %v1351_v33 = vpop.f32.mrf.mxu1 }
 0x29b   : > { %v1352_v36 = vadd.f32 %v1351_v33, %v1272_v34 }
 0x29c   : > { %v1353_v35 = vpop.f32.mrf.mxu1 }
 0x29d   : > { %v1354_v37 = vadd.f32 %v1353_v35, %v1272_v34 }
 0x29f   : > { %v1358_v22 = vcombine.low %v1352_v36, %v1354_v37 }
 0x2a1   : > { %1360 = vst [vmem:[%s284_s11] sm:$0xff] %v1358_v22 }
 0x2a2   : > { %1690 = shalt.err (!%p1687_p0)
}
 0x2a3   : > { %s1691_s19 = scalar_lea.hbm %s1374_s15, 128  ;;  %s1695_s12 = scalar_lea.hbm %s2148_s6, 256 }
 0x2a4   : > { %p1692_p5 = scmp.ne.s32.totalorder %s1374_s15, %s1691_s19  ;;  %p1696_p4 = scmp.lt.s32.totalorder %s1374_s15, %s2148_s6 }
 0x2a5   : > { %p1697_p6 = scmp.lt.s32.totalorder %s1695_s12, %s1691_s19 }
 0x2a6   : > { %p1693_p9 = pnand %p1692_p5, %p2172_p11 }
 0x2a7   : > { %p1698_p8 = por %p1697_p6, %p1696_p4 }
 0x2a8   : > { %p1694_p1 = pneg %p1693_p9 }
 0x2aa   : > { %p1699_p3 = pnand %p1698_p8, %p1694_p1 }
 0x2ac   : > { %1702 = shalt.err (!%p1699_p3)
}
 0x2ad   : > { %1516 = dma.vmem_to_hbm [thread:$0]  (%p2172_p11), %s1377_s13, 128, %s1374_s15, %s1362_s14  }
 0x2ae PF: > { %s1388_s11 = sand.u32 1, %s1733_s21   ;;  %p2173_p7 = scmp.ne.s32.totalorder %s2154_s28, 0 }
 0x2af   : > { %p2174_p12 = scmp.ge.s32.totalorder %s1745_s24, 2  ;;  %s1389_s8 = scalar_lea.sflag [#allocation5], %s1388_s11 }
 0x2b1   : > { %p1527_p10 = pnand %p2174_p12, %p2173_p7 }
 0x2b3   : > { %p1528_p2 = pneg %p1527_p10 }
 0x2b5   : > { %1728 = dma.done.wait (%p1528_p2), %s1389_s8, 128  }
 0x2b6   : > { %1730 = vsyncadd (%p1528_p2), %s1389_s8, 4294967168  ;;  %p20_p13 = scmp.ge.s32.totalorder %s1853_s9, 4   ;;  %s2175_s21 = smov %s1737_s22 }
 0x2b7   : > { %s2176_s22 = smov %s1741_s23  ;;  %s2177_s23 = smov %s1870_s17 }
 0x2b8   : > { %s2178_s24 = smov %s1853_s9  ;;  %22 = sbr.rel (!%p20_p13) target bundleno = 6 (0x6), region = 101 }
 0x2bd   :  { %1394 = vsyncpa [#allocation4], 1 }
 0x2be   :  { %1396 = vsyncpa [#allocation4 + $0x1], 1 }
 0x2bf   :  { %1397 = vsyncpa [#allocation7], 1 }
 0x2c0   :  { %1398 = vsyncpa [#allocation5], 1 }
 0x2c1   :  { %1400 = vsyncpa [#allocation5 + $0x1], 1 }

</bundles_post_ra>
